<compile_context>
chip_gen: v7x
topology: tpu7x:2x2x1
jax: 0.10.0
libtpu: 0.0.40
codegen_flags: <defaults>
</compile_context>

<pallas_src>
import math

import jax
import jax.numpy as jnp
from jax import lax
from jax.experimental import pallas as pl
from jax.experimental.pallas import tpu as pltpu


# ----------------------------------------------------------------------------
# Fixed-table layout (freq='h', embed_type='fixed' path of TemporalEmbedding)
# ----------------------------------------------------------------------------
_MONTH, _DAY, _WEEKDAY, _HOUR, _MINUTE = 13, 32, 7, 24, 60
_T_ROWS = _MONTH + _DAY + _WEEKDAY + _HOUR + _MINUTE       # 136 temporal rows
# Row offset of each x_mark field into the concatenated table, in the field
# order used by the PyTorch forward: [month, day, weekday, hour, minute, second].
_FIELD_OFFSETS = (
    0,                                    # month
    _MONTH,                               # day
    _MONTH + _DAY,                        # weekday
    _MONTH + _DAY + _WEEKDAY,             # hour
    _MONTH + _DAY + _WEEKDAY + _HOUR,     # minute
    _MONTH + _DAY + _WEEKDAY + _HOUR,     # "second" -> minute table (as in torch code)
)


# ----------------------------------------------------------------------------
# Parameter / table construction (deterministic, mirrors the PyTorch __init__)
# ----------------------------------------------------------------------------
def sinusoid_table(n, d_model):
    """FixedEmbedding / PositionalEmbedding table: sin on even cols, cos on odd."""
    position = jnp.arange(n, dtype=jnp.float32)[:, None]
    div_term = jnp.exp(
        jnp.arange(0, d_model, 2, dtype=jnp.float32) * -(math.log(10000.0) / d_model)
    )
    ang = position * div_term
    tab = jnp.zeros((n, d_model), dtype=jnp.float32)
    tab = tab.at[:, 0::2].set(jnp.sin(ang))
    tab = tab.at[:, 1::2].set(jnp.cos(ang))
    return tab


def kaiming_conv1d_weight(key, c_in, d_model, ksize=3):
    """nn.init.kaiming_normal_(mode='fan_in', nonlinearity='leaky_relu')."""
    fan_in = c_in * ksize
    gain = math.sqrt(2.0 / (1.0 + 0.01 ** 2))  # leaky_relu default slope 0.01
    std = gain / math.sqrt(fan_in)
    return std * jax.random.normal(key, (d_model, c_in, ksize), dtype=jnp.float32)


# ----------------------------------------------------------------------------
# Pallas kernel: fused circular conv1d + temporal multi-hot matmul + positional
# ----------------------------------------------------------------------------
def data_embedding_kernel(x_ref, idx_ref, w_ref, tab_ref, o_ref):
    block_b, seq_len, _ = x_ref.shape
    n_fields = idx_ref.shape[-1]
    t_rows = tab_ref.shape[0] - seq_len            # temporal rows; tail is PE

    # Loop-invariant values (hoisted: broadcasts / table loads done once).
    col_id = lax.broadcasted_iota(jnp.int32, (seq_len, t_rows), 1)   # (L, T)
    temporal_tab = tab_ref[0:t_rows, :]                              # (T, D)
    pos_emb = tab_ref[t_rows:t_rows + seq_len, :]                    # (L, D)
    w_prev = w_ref[0]                                                # (C, D)
    w_curr = w_ref[1]
    w_next = w_ref[2]

    for b in range(block_b):                       # static unroll (block_b small)
        xb = x_ref[b]                              # (L, C)
        # Circular Conv1d(k=3, pad=1) taps via in-kernel sublane rotation (XLU).
        x_prev = pltpu.roll(xb, 1, axis=0)                 # row t -> x[t-1 mod L]
        x_next = pltpu.roll(xb, seq_len - 1, axis=0)       # row t -> x[t+1 mod L]

        acc = jnp.dot(x_prev, w_prev, preferred_element_type=jnp.float32)
        acc = acc + jnp.dot(xb, w_curr, preferred_element_type=jnp.float32)
        acc = acc + jnp.dot(x_next, w_next, preferred_element_type=jnp.float32)

        # Temporal embedding: multi-hot (L, T) built from the 6 stamp fields
        # (offsets pre-added in the wrapper), then one MXU matmul against the
        # concatenated fixed tables.  Coinciding fields simply get weight 2.
        idx_b = idx_ref[b]                         # (L, 6) int32
        multi_hot = (col_id == idx_b[:, 0:1]).astype(jnp.float32)
        for j in range(1, n_fields):
            multi_hot = multi_hot + (col_id == idx_b[:, j:j + 1]).astype(jnp.float32)
        acc = acc + jnp.dot(multi_hot, temporal_tab,
                            preferred_element_type=jnp.float32)

        o_ref[b] = (acc + pos_emb).astype(o_ref.dtype)


def _pick_block_b(B, L, C, D, unroll_cap=8, target_rows=1024):
    """Batch elements per grid step.

    Big enough to amortize ~0.35us/step overhead, small enough that the
    double-buffered blocks stay well inside v7x's 64 MiB VMEM, and (when B
    allows) leaving >=2 grid steps so both v7x TensorCores get work.
    """
    bt = max(1, min(B, max(1, target_rows // max(L, 1)), unroll_cap))
    per_elem_bytes = L * (C + 6 + D) * 4           # x + idx + out, per batch elem
    bt = max(1, min(bt, (24 * 1024 * 1024) // (2 * per_elem_bytes)))
    if B >= 2:
        bt = max(1, min(bt, B // 2))               # keep >=2 parallel grid steps
    while B % bt:
        bt -= 1
    return bt


def data_embedding(x, x_mark, conv_w, tables, pe_table, *, block_b=None,
                   out_dtype=jnp.float32):
    """Forward of DataEmbedding (dropout in eval mode == identity).

    x       : (B, L, C_in) float32
    x_mark  : (B, L, 6) stamps [month, day, weekday, hour, minute, second]
    conv_w  : (d_model, C_in, 3) Conv1d weight
    tables  : dict of fixed sinusoidal embedding tables
    pe_table: (max_len, d_model) positional table
    """
    B, L, C = x.shape
    D = conv_w.shape[0]

    # --- tiny, VMEM-resident parameter packing ------------------------------
    # Conv taps as (3, C, D): tap k pairs with x[t - 1 + k mod L].
    w_taps = jnp.transpose(conv_w, (2, 1, 0))                         # (3, C, D)
    # Concatenated fixed temporal tables + positional rows appended at the end.
    table = jnp.concatenate(
        [tables["month"], tables["day"], tables["weekday"],
         tables["hour"], tables["minute"], pe_table[:L]], axis=0)     # (136+L, D)
    n_tab_rows = _T_ROWS + L

    # x_mark -> int32 indices with per-field row offsets pre-added, so each
    # field directly indexes the concatenated table inside the kernel.
    offs = jnp.asarray(_FIELD_OFFSETS, dtype=jnp.int32)
    idx = x_mark.astype(jnp.int32) + offs                             # (B, L, 6)

    # --- tiling / VMEM budget ------------------------------------------------
    if block_b is None:
        block_b = _pick_block_b(B, L, C, D)
    grid = (B // block_b,)

    block_bytes = 2 * block_b * L * (C + 6 + D) * 4      # double-buffered blocks
    resident_bytes = (3 * C * D + n_tab_rows * D) * 4    # weights + table
    vmem_limit = int(min(64 * 1024 * 1024,
                         max(16 * 1024 * 1024, 2 * (block_bytes + resident_bytes))))

    out = pl.pallas_call(
        data_embedding_kernel,
        out_shape=jax.ShapeDtypeStruct((B, L, D), out_dtype),
        grid=grid,
        in_specs=[
            pl.BlockSpec((block_b, L, C), lambda i: (i, 0, 0)),       # x
            pl.BlockSpec((block_b, L, 6), lambda i: (i, 0, 0)),       # stamp idx
            pl.BlockSpec((3, C, D), lambda i: (0, 0, 0)),             # conv taps
            pl.BlockSpec((n_tab_rows, D), lambda i: (0, 0)),          # tables + PE
        ],
        out_specs=pl.BlockSpec((block_b, L, D), lambda i: (i, 0, 0)),
        compiler_params=pltpu.CompilerParams(
            dimension_semantics=("parallel",),
            vmem_limit_bytes=vmem_limit,
        ),
    )(x, idx, w_taps, table)
    # TODO(synk): nn.Dropout(p=0.1) is treated as identity (eval mode).
    return out


# ----------------------------------------------------------------------------
# Pure-JAX reference for verification
# ----------------------------------------------------------------------------
def data_embedding_ref(x, x_mark, conv_w, tables, pe_table):
    B, L, C = x.shape
    x_prev = jnp.roll(x, 1, axis=1)
    x_next = jnp.roll(x, -1, axis=1)
    val = (jnp.einsum("blc,cd->bld", x_prev, conv_w[:, :, 0].T)
           + jnp.einsum("blc,cd->bld", x, conv_w[:, :, 1].T)
           + jnp.einsum("blc,cd->bld", x_next, conv_w[:, :, 2].T))
    idx = x_mark.astype(jnp.int32)
    temb = (jnp.take(tables["minute"], idx[:, :, 5], axis=0)   # "second" (minute table)
            + jnp.take(tables["minute"], idx[:, :, 4], axis=0)
            + jnp.take(tables["hour"], idx[:, :, 3], axis=0)
            + jnp.take(tables["weekday"], idx[:, :, 2], axis=0)
            + jnp.take(tables["day"], idx[:, :, 1], axis=0)
            + jnp.take(tables["month"], idx[:, :, 0], axis=0))
    return val + temb + pe_table[None, :L]


if __name__ == "__main__":
    B, L, C_IN, D_MODEL = 2, 8, 7, 128     # D = 128 -> lane-dense output stores
    MAX_LEN = 64                           # positional-table length (module default 5000)

    key = jax.random.PRNGKey(0)
    k_x, k_w, k_m = jax.random.split(key, 3)

    # Inputs.
    x = jax.random.normal(k_x, (B, L, C_IN), dtype=jnp.float32)
    # x_mark fields: [month(0..12), day(0..31), weekday(0..6), hour(0..23),
    #                 minute(0..59), second(0..59)]
    highs = jnp.array([13, 32, 7, 24, 60, 60], dtype=jnp.int32)
    x_mark = (jax.random.randint(k_m, (B, L, 6), 0, 1_000_000) % highs)
    x_mark = x_mark.astype(jnp.float32)    # module casts to long internally

    # Parameters / fixed tables.
    conv_w = kaiming_conv1d_weight(k_w, C_IN, D_MODEL, ksize=3)
    tables = {
        "minute": sinusoid_table(_MINUTE, D_MODEL),
        "hour": sinusoid_table(_HOUR, D_MODEL),
        "weekday": sinusoid_table(_WEEKDAY, D_MODEL),
        "day": sinusoid_table(_DAY, D_MODEL),
        "month": sinusoid_table(_MONTH, D_MODEL),
    }
    pe_table = sinusoid_table(MAX_LEN, D_MODEL)

    out = data_embedding(x, x_mark, conv_w, tables, pe_table)
    out = jax.block_until_ready(out)

    ref = data_embedding_ref(x, x_mark, conv_w, tables, pe_table)
    assert out.shape == (B, L, D_MODEL)
    assert jnp.allclose(out, ref, atol=5e-3, rtol=5e-3), "mismatch vs reference"

    print("KERNEL_OK")
</pallas_src>

<mosaic_0001>
module attributes {stable_mosaic.version = 11 : i64} {
  func.func @data_embedding_kernel(%arg0: i32, %arg1: memref<1x8x7xf32, #tpu.memory_space<vmem>>, %arg2: memref<1x8x6xi32, #tpu.memory_space<vmem>>, %arg3: memref<3x7x128xf32, #tpu.memory_space<vmem>>, %arg4: memref<144x128xf32, #tpu.memory_space<vmem>>, %arg5: memref<1x8x128xf32, #tpu.memory_space<vmem>>) attributes {dimension_semantics = [#tpu.dimension_semantics<parallel>], iteration_bounds = array<i64: 2>, scalar_prefetch = 0 : i64, scratch_operands = 0 : i64, tpu.core_type = #tpu.core_type<tc>, window_params = [{transform_indices = @transform_0, window_bounds = array<i64: 1, 8, 7>}, {transform_indices = @transform_1, window_bounds = array<i64: 1, 8, 6>}, {pipeline_mode = #tpu.pipeline_mode<synchronous>, transform_indices = @transform_2, window_bounds = array<i64: 3, 7, 128>}, {pipeline_mode = #tpu.pipeline_mode<synchronous>, transform_indices = @transform_3, window_bounds = array<i64: 144, 128>}, {transform_indices = @transform_4, window_bounds = array<i64: 1, 8, 128>}]} {
    %0 = tpu.iota {dimensions = array<i32: 1>} : vector<8x136xi32>
    %c0 = arith.constant 0 : index
    %c0_0 = arith.constant 0 : index
    %1 = vector.load %arg4[%c0, %c0_0] : memref<144x128xf32, #tpu.memory_space<vmem>>, vector<136x128xf32>
    %c136 = arith.constant 136 : index
    %c0_1 = arith.constant 0 : index
    %2 = vector.load %arg4[%c136, %c0_1] : memref<144x128xf32, #tpu.memory_space<vmem>>, vector<8x128xf32>
    %c0_2 = arith.constant 0 : index
    %c0_3 = arith.constant 0 : index
    %c0_4 = arith.constant 0 : index
    %3 = vector.load %arg3[%c0_2, %c0_3, %c0_4] : memref<3x7x128xf32, #tpu.memory_space<vmem>>, vector<1x7x128xf32>
    %4 = vector.shape_cast %3 : vector<1x7x128xf32> to vector<7x128xf32>
    %c1 = arith.constant 1 : index
    %c0_5 = arith.constant 0 : index
    %c0_6 = arith.constant 0 : index
    %5 = vector.load %arg3[%c1, %c0_5, %c0_6] : memref<3x7x128xf32, #tpu.memory_space<vmem>>, vector<1x7x128xf32>
    %6 = vector.shape_cast %5 : vector<1x7x128xf32> to vector<7x128xf32>
    %c2 = arith.constant 2 : index
    %c0_7 = arith.constant 0 : index
    %c0_8 = arith.constant 0 : index
    %7 = vector.load %arg3[%c2, %c0_7, %c0_8] : memref<3x7x128xf32, #tpu.memory_space<vmem>>, vector<1x7x128xf32>
    %8 = vector.shape_cast %7 : vector<1x7x128xf32> to vector<7x128xf32>
    %c0_9 = arith.constant 0 : index
    %c0_10 = arith.constant 0 : index
    %c0_11 = arith.constant 0 : index
    %9 = vector.load %arg1[%c0_9, %c0_10, %c0_11] : memref<1x8x7xf32, #tpu.memory_space<vmem>>, vector<1x8x7xf32>
    %10 = vector.shape_cast %9 : vector<1x8x7xf32> to vector<8x7xf32>
    %c1_i32 = arith.constant 1 : i32
    %11 = tpu.dynamic_rotate %10 by %c1_i32 dim 0 : vector<8x7xf32>, i32 -> vector<8x7xf32>
    %c7_i32 = arith.constant 7 : i32
    %12 = tpu.dynamic_rotate %10 by %c7_i32 dim 0 : vector<8x7xf32>, i32 -> vector<8x7xf32>
    %cst = arith.constant dense<0.000000e+00> : vector<8x128xf32>
    %13 = tpu.matmul %11, %4, %cst {dimension_numbers = #tpu.dot_dimension_numbers<[1], [0], [0], [1], [0, 0, 1, 1], [], []>} : vector<8x7xf32>, vector<7x128xf32>, vector<8x128xf32> -> vector<8x128xf32>
    %cst_12 = arith.constant dense<0.000000e+00> : vector<8x128xf32>
    %14 = tpu.matmul %10, %6, %cst_12 {dimension_numbers = #tpu.dot_dimension_numbers<[1], [0], [0], [1], [0, 0, 1, 1], [], []>} : vector<8x7xf32>, vector<7x128xf32>, vector<8x128xf32> -> vector<8x128xf32>
    %15 = arith.addf %13, %14 : vector<8x128xf32>
    %cst_13 = arith.constant dense<0.000000e+00> : vector<8x128xf32>
    %16 = tpu.matmul %12, %8, %cst_13 {dimension_numbers = #tpu.dot_dimension_numbers<[1], [0], [0], [1], [0, 0, 1, 1], [], []>} : vector<8x7xf32>, vector<7x128xf32>, vector<8x128xf32> -> vector<8x128xf32>
    %17 = arith.addf %15, %16 : vector<8x128xf32>
    %c0_14 = arith.constant 0 : index
    %c0_15 = arith.constant 0 : index
    %c0_16 = arith.constant 0 : index
    %18 = vector.load %arg2[%c0_14, %c0_15, %c0_16] : memref<1x8x6xi32, #tpu.memory_space<vmem>>, vector<1x8x6xi32>
    %19 = vector.shape_cast %18 : vector<1x8x6xi32> to vector<8x6xi32>
    %20 = vector.extract_strided_slice %19 {offsets = [0, 0], sizes = [8, 1], strides = [1, 1]} : vector<8x6xi32> to vector<8x1xi32>
    %21 = vector.broadcast %20 : vector<8x1xi32> to vector<8x136xi32>
    %22 = arith.cmpi eq, %0, %21 : vector<8x136xi32>
    %23 = arith.extui %22 : vector<8x136xi1> to vector<8x136xi32>
    %24 = arith.sitofp %23 : vector<8x136xi32> to vector<8x136xf32>
    %25 = vector.extract_strided_slice %19 {offsets = [0, 1], sizes = [8, 1], strides = [1, 1]} : vector<8x6xi32> to vector<8x1xi32>
    %26 = vector.broadcast %25 : vector<8x1xi32> to vector<8x136xi32>
    %27 = arith.cmpi eq, %0, %26 : vector<8x136xi32>
    %28 = arith.extui %27 : vector<8x136xi1> to vector<8x136xi32>
    %29 = arith.sitofp %28 : vector<8x136xi32> to vector<8x136xf32>
    %30 = arith.addf %24, %29 : vector<8x136xf32>
    %31 = vector.extract_strided_slice %19 {offsets = [0, 2], sizes = [8, 1], strides = [1, 1]} : vector<8x6xi32> to vector<8x1xi32>
    %32 = vector.broadcast %31 : vector<8x1xi32> to vector<8x136xi32>
    %33 = arith.cmpi eq, %0, %32 : vector<8x136xi32>
    %34 = arith.extui %33 : vector<8x136xi1> to vector<8x136xi32>
    %35 = arith.sitofp %34 : vector<8x136xi32> to vector<8x136xf32>
    %36 = arith.addf %30, %35 : vector<8x136xf32>
    %37 = vector.extract_strided_slice %19 {offsets = [0, 3], sizes = [8, 1], strides = [1, 1]} : vector<8x6xi32> to vector<8x1xi32>
    %38 = vector.broadcast %37 : vector<8x1xi32> to vector<8x136xi32>
    %39 = arith.cmpi eq, %0, %38 : vector<8x136xi32>
    %40 = arith.extui %39 : vector<8x136xi1> to vector<8x136xi32>
    %41 = arith.sitofp %40 : vector<8x136xi32> to vector<8x136xf32>
    %42 = arith.addf %36, %41 : vector<8x136xf32>
    %43 = vector.extract_strided_slice %19 {offsets = [0, 4], sizes = [8, 1], strides = [1, 1]} : vector<8x6xi32> to vector<8x1xi32>
    %44 = vector.broadcast %43 : vector<8x1xi32> to vector<8x136xi32>
    %45 = arith.cmpi eq, %0, %44 : vector<8x136xi32>
    %46 = arith.extui %45 : vector<8x136xi1> to vector<8x136xi32>
    %47 = arith.sitofp %46 : vector<8x136xi32> to vector<8x136xf32>
    %48 = arith.addf %42, %47 : vector<8x136xf32>
    %49 = vector.extract_strided_slice %19 {offsets = [0, 5], sizes = [8, 1], strides = [1, 1]} : vector<8x6xi32> to vector<8x1xi32>
    %50 = vector.broadcast %49 : vector<8x1xi32> to vector<8x136xi32>
    %51 = arith.cmpi eq, %0, %50 : vector<8x136xi32>
    %52 = arith.extui %51 : vector<8x136xi1> to vector<8x136xi32>
    %53 = arith.sitofp %52 : vector<8x136xi32> to vector<8x136xf32>
    %54 = arith.addf %48, %53 : vector<8x136xf32>
    %cst_17 = arith.constant dense<0.000000e+00> : vector<8x128xf32>
    %55 = tpu.matmul %54, %1, %cst_17 {dimension_numbers = #tpu.dot_dimension_numbers<[1], [0], [0], [1], [0, 0, 1, 1], [], []>} : vector<8x136xf32>, vector<136x128xf32>, vector<8x128xf32> -> vector<8x128xf32>
    %56 = arith.addf %17, %55 : vector<8x128xf32>
    %57 = arith.addf %56, %2 : vector<8x128xf32>
    %c0_18 = arith.constant 0 : index
    %c0_19 = arith.constant 0 : index
    %c0_20 = arith.constant 0 : index
    %58 = vector.load %arg5[%c0_18, %c0_19, %c0_20] : memref<1x8x128xf32, #tpu.memory_space<vmem>>, vector<1x8x128xf32>
    %59 = vector.shape_cast %58 : vector<1x8x128xf32> to vector<8x128xf32>
    %60 = vector.shape_cast %57 : vector<8x128xf32> to vector<1x8x128xf32>
    tpu.vector_store %arg5[%c0_18, %c0_19, %c0_20], %60 {strides = array<i32>} : memref<1x8x128xf32, #tpu.memory_space<vmem>>, vector<1x8x128xf32>,
    return
  }
  func.func @transform_0(%arg0: i32) -> (i32, i32, i32) {
    %c0_i32 = arith.constant 0 : i32
    %c0_i32_0 = arith.constant 0 : i32
    %c0_i32_1 = arith.constant 0 : i32
    return %arg0, %c0_i32, %c0_i32_0 : i32, i32, i32
  }
  func.func @transform_1(%arg0: i32) -> (i32, i32, i32) {
    %c0_i32 = arith.constant 0 : i32
    %c0_i32_0 = arith.constant 0 : i32
    %c0_i32_1 = arith.constant 0 : i32
    return %arg0, %c0_i32, %c0_i32_0 : i32, i32, i32
  }
  func.func @transform_2(%arg0: i32) -> (i32, i32, i32) {
    %c0_i32 = arith.constant 0 : i32
    %c0_i32_0 = arith.constant 0 : i32
    %c0_i32_1 = arith.constant 0 : i32
    %c0_i32_2 = arith.constant 0 : i32
    return %c0_i32, %c0_i32_0, %c0_i32_1 : i32, i32, i32
  }
  func.func @transform_3(%arg0: i32) -> (i32, i32) {
    %c0_i32 = arith.constant 0 : i32
    %c0_i32_0 = arith.constant 0 : i32
    %c0_i32_1 = arith.constant 0 : i32
    return %c0_i32, %c0_i32_0 : i32, i32
  }
  func.func @transform_4(%arg0: i32) -> (i32, i32, i32) {
    %c0_i32 = arith.constant 0 : i32
    %c0_i32_0 = arith.constant 0 : i32
    %c0_i32_1 = arith.constant 0 : i32
    return %arg0, %c0_i32, %c0_i32_0 : i32, i32, i32
  }
}

</mosaic_0001>

<bundles_post_ra>
// kernel: tpu_custom_call.1
= control target key start
LH: loop header
LB: loop body
LE: loop exit
PB: predicated region body
PF: predicated region fallthrough
CT: control target
= control target key end

     0   :  { %9 = vsyncpa [#allocation3], 0  ;;  %s1187_s0 = inlined_call_operand.vmem [shape: f32[2,8,7], index: 0, kind: input, shape index: {}]   ;;  %s1188_s1 = inlined_call_operand.vmem [shape: s32[2,8,6], index: 1, kind: input, shape index: {}]   ;;  %s1189_s2 = inlined_call_operand.vmem [shape: f32[3,7,128], index: 2, kind: input, shape index: {}]   ;;  %s1190_s3 = inlined_call_operand.hbm [shape: f32[144,128], index: 3, kind: input, shape index: {}]   ;;  %s1191_s4 = inlined_call_operand.hbm [shape: f32[2,8,128], index: 4, kind: output, shape index: {}]  }
   0x1   :  { %10 = vsyncpa [#allocation4], 0 }
   0x2   :  { %12 = vsyncpa [#allocation4 + $0x1], 0  ;;  %s1004_s15 = smov 0   ;;  %s1006_s16 = smov 0  }
   0x3   :  { %s1008_s17 = smov 0   ;;  %s1010_s18 = smov 0  }
   0x4 LB: > { %s1025_s19 = sadd.s32 4294967295, %s964_s18   ;;  %s724_s20 = sadd.s32 4294967294, %s964_s18   ;;  %s964_s18 = sphi %s1010_s18, %s1207_s18   ;;  %s960_s17 = sphi %s1008_s17, %s1206_s17   ;;  %s956_s16 = sphi %s1006_s16, %s1205_s16   ;;  %s952_s15 = sphi %s1004_s15, %s1204_s15  }
   0x5   : > { %s1029_s21 = sadd.s32 1, %s964_s18   ;;  %s119_s22 = sadd.s32 1, %s960_s17 }
   0x6   : > { %s116_s23 = ssub.s32 %s964_s18, %s1029_s21  ;;  %p129_p0 = scmp.ne.s32.totalorder %s960_s17, %s956_s16 }
   0x7   : > { %p117_p1 = scmp.eq.s32.totalorder %s116_s23, 0  ;;  %p130_p2 = scmp.eq.s32.totalorder %s1025_s19, 1 }
   0x8   : > { %p135_p3 = scmp.ne.s32.totalorder %s956_s16, %s952_s15  ;;  %p136_p4 = scmp.eq.s32.totalorder %s724_s20, 1 }
   0x9   : > { %s1040_s24 = scalar_select %p117_p1, %s960_s17, %s119_s22  }
   0xa   : > { %p1042_p5 = por %p130_p2, %p129_p0  ;;  %p1046_p6 = por %p136_p4, %p135_p3 }
   0xb   : > { %p725_p7 = scmp.ge.s32.totalorder %s964_s18, 1  ;;  %p143_p8 = scmp.lt.s32.totalorder %s964_s18, 3 }
   0xc   : > { %s1195_s25 = scalar_select %p1042_p5, 1, 0 }
   0xd   : > { %s1196_s26 = scalar_select %p1046_p6, 1, 0 }
   0xe   : > { %p1192_p9 = scmp.eq.s32.totalorder %s1025_s19, 0  ;;  %p1053_p10 = pnand %p725_p7, %p143_p8 }
   0xf   : > { %s966_s28 = smov [#allocation2]   ;;  %s870_s7 = scalar_lea.hbm %s1190_s3, 2304 }
  0x10   : > { %s1197_s27 = scalar_select %p1053_p10, 1, 0 }
  0x11   : > { %s158_s29 = sshll.u32 %s966_s28, 4  ;;  %p809_p11 = pneg %p1053_p10  ;;  %s159_s29 = int_to_ptr.vmem [resolvable:$true] %s158_s29 }
  0x12   : > { %p871_p13 = scmp.ne.s32.totalorder %s1190_s3, %s870_s7  ;;  %p877_p3 = scmp.lt.u32.totalorder %s870_s7, %s1190_s3 }
  0x13   : > { %p1061_p12 = pnand %p1192_p9, %p809_p11 }
  0x15   : > { %p872_p0 = pneg %p1061_p12 }
  0x17   : > { %p873_p1 = pnand %p872_p0, %p871_p13 }
  0x19   : > { %p874_p2 = pneg %p873_p1 }
  0x1b   : > { %p879_p4 = pnand %p877_p3, %p874_p2 }
  0x1d   : > { %882 = shalt.err (!%p879_p4)
}
  0x1e   : > { %s883_s12 = scalar_lea.vmem %s159_s29, 2304  ;;  %p891_p9 = scmp.lt.s32.totalorder %s159_s29, %s159_s29 }
  0x1f   : > { %p884_p7 = scmp.ne.s32.totalorder %s159_s29, %s883_s12  ;;  %p892_p6 = scmp.lt.s32.totalorder %s883_s12, %s883_s12 }
  0x21   : > { %p886_p8 = pnand %p884_p7, %p872_p0  ;;  %p893_p5 = por %p892_p6, %p891_p9 }
  0x23   : > { %p887_p11 = pneg %p886_p8 }
  0x25   : > { %p894_p10 = pnand %p893_p5, %p887_p11 }
  0x27   : > { %897 = shalt.err (!%p894_p10)
}
  0x28   : > { %s967_s13 = smov 128   ;;  %s968_s14 = smov 8  }
  0x29   : > { %812 = dma.hbm_to_vmem [thread:$0]  (!%p1061_p12), %s1190_s3, 2304, %s159_s29, [#allocation3], %s967_s13, %s967_s13, %s968_s14  }
  0x2a   : > { %p1199_p13 = scmp.ne.s32.totalorder %s1197_s27, 0 }
  0x2b   : > { %p1200_p1 = scmp.eq.s32.totalorder (!%p1199_p13), %s1025_s19, 0 }
  0x2c   : > { %188 = sbr.rel (%p1199_p13) target bundleno = 435 (0x1b3), region = 36 }
  0x33   : > { %943 = dma.done.wait (%p1200_p1), [#allocation3], 2304   ;;  %p1201_p0 = pmov %p1200_p1 }
  0x34   : > { %p217_p5 = scmp.lt.s32.totalorder %s1025_s19, 1  ;;  %v969_v0 = vmov 0   ;;  %v970_v1 = vmov 2   ;;  %v971_v2 = vmov 0.0|0.0   ;;  %v972_v3 = vmov 0.0   ;;  %v228_v5 = vld [vmem:[#allocation2] sm:$0xff] }
  0x35   : > { %945 = vsyncadd (%p1201_p0), [#allocation3], 4294964992  ;;  %864 = vset.pattern.permute.xlu0 %v969_v0  ;;  %866 = vset.pattern.permute.xlu1 %v970_v1  ;;  %v229_v6 = vld [vmem:[#allocation2 + $0x8] sm:$0xff]  ;;  %v230_v8 = vld [vmem:[#allocation2 + $0x10] sm:$0xff]  ;;  %vm258_vm0 = vcmask 1046528   ;;  %vm973_vm1 = vmmov 0   ;;  %v225_v40 = vlaneseq }
  0x36   : > { %s218_s23 = scalar_select %p217_p5, %s1025_s19, 1  ;;  %779 = vmatprep.subr.bf16.mxu1 %v971_v2  ;;  %764 = vmatprep.subr.mxu0 %v972_v3  ;;  %v780_v7 = vpack.c.bf16 %v229_v6, %v228_v5  ;;  %v231_v9 = vld [vmem:[#allocation2 + $0x18] sm:$0xff]  ;;  %v733_v11 = vld [vmem:[%s1189_s2 + $0x8] sm:$0x7f]  ;;  %vm254_vm2 = vcmask 56320   ;;  %v974_v13 = vmov 1  }
  0x37   : > { %766 = vmatprep.mubr.msk.f32.mxu0 %vm973_vm1, %v972_v3  ;;  %v783_v10 = vpack.c.bf16 %v231_v9, %v230_v8  ;;  %765 = vmatpush3.msk.msra.mxu0 %vm258_vm0, %v733_v11  ;;  %v975_v14 = vmov 3   ;;  %v232_v15 = vld [vmem:[#allocation2 + $0x20] sm:$0xff]  ;;  %v233_v16 = vld [vmem:[#allocation2 + $0x28] sm:$0xff]  ;;  %v246_v17 = vld [vmem:[%s1189_s2] sm:$0x7f]  ;;  %v976_v22 = vmov 4  }
  0x38   : > { %s731_s27 = sshll.u32 %s218_s23, 3  ;;  %781 = vmatpush1.bf16.msra.mxu1 %v780_v7  ;;  %v786_v18 = vpack.c.bf16 %v233_v16, %v232_v15  ;;  %769 = vmatprep.subr.mxu0 %v972_v3  ;;  %v234_v20 = vld [vmem:[#allocation2 + $0x30] sm:$0xff]  ;;  %v235_v21 = vld [vmem:[#allocation2 + $0x38] sm:$0xff]  ;;  %v977_v23 = vmov 5   ;;  %v734_v24 = vld [vmem:[%s1189_s2 + $0x10] sm:$0x7f] }
  0x39   : > { %s224_s30 = scalar_lea.vmem %s1188_s1, %s731_s27  ;;  %s220_s7 = scalar_lea.vmem %s1187_s0, %s731_s27  ;;  %782 = vmatprep.subr.bf16.mxu1 %v971_v2  ;;  %v789_v25 = vpack.c.bf16 %v235_v21, %v234_v20  ;;  %v236_v27 = vld [vmem:[#allocation2 + $0x40] sm:$0xff]  ;;  %v237_v28 = vld [vmem:[#allocation2 + $0x48] sm:$0xff]  ;;  %v238_v30 = vld [vmem:[#allocation2 + $0x50] sm:$0xff]  ;;  %v226_v41 = vand.u32 127, %v225_v40  ;;  %vm550_vm15 = vcmask 64512  }
  0x3a   : > { %v485_v4 = vld [vmem:[%s224_s30] sm:$0xff]  ;;  %v792_v29 = vpack.c.bf16 %v237_v28, %v236_v27  ;;  %v240_v33 = vld [vmem:[#allocation2 + $0x60] sm:$0xff]  ;;  %v241_v34 = vld [vmem:[#allocation2 + $0x68] sm:$0xff]  ;;  %s214_s14 = sand.u32 1, %s956_s16   ;;  %s755_s22 = sshll.u32 %s1025_s19, 7 }
  0x3b   : > { %487 = vperm.xlu0 %864, %v485_v4   ;;  %507 = vperm.xlu1 %866, %v485_v4   ;;  %v251_v12 = vld [vmem:[%s220_s7] sm:$0xff]  ;;  %v798_v35 = vpack.c.bf16 %v241_v34, %v240_v33  ;;  %v242_v36 = vld [vmem:[#allocation2 + $0x70] sm:$0xff]  ;;  %v244_v39 = vld [vmem:[#allocation2 + $0x80] sm:$0xff]  ;;  %v227_v42 = vadd.s32 128, %v226_v41  ;;  %s730_s20 = sshll.u32 %s214_s14, 3  ;;  %s1145_s30 = scalar_lea.hbm %s1191_s4, %s755_s22 }
  0x3c   : > { %784 = vmatpush1.bf16.msra.mxu1 %v783_v10  ;;  %767 = vmatmul.mubr.msk.f32.vlgmr.msra.gmra.mrb[0].mxu0 %vm254_vm2, %v251_v12  ;;  %v252_v19 = vrot.slane %v251_v12, 7  ;;  %v253_v26 = vrot.slane %v251_v12, 1  ;;  %v239_v31 = vld [vmem:[#allocation2 + $0x58] sm:$0xff]  ;;  %s216_s23 = scalar_lea.vmem [#allocation5], %s730_s20  ;;  %s628_s5 = scalar_lea.sflag [#allocation4], %s214_s14 }
  0x3d   : > { %785 = vmatprep.subr.bf16.mxu1 %v971_v2  ;;  %770 = vmatpush3.msk.msra.mxu0 %vm258_vm0, %v246_v17  ;;  %v795_v32 = vpack.c.bf16 %v239_v31, %v238_v30  ;;  %v243_v37 = vld [vmem:[#allocation2 + $0x78] sm:$0xff]  ;;  %s641_s27 = sshll.u32 %s216_s23, 4  ;;  %p1202_p9 = scmp.ne.s32.totalorder %s1195_s25, 0  ;;  %s1147_s27 = int_to_ptr.vmem [resolvable:$true] %s641_s27 }
  0x3e   : > { %771 = vmatprep.mubr.msk.f32.mxu0 %vm973_vm1, %v972_v3  ;;  %774 = vmatprep.subr.mxu0 %v972_v3  ;;  %v801_v38 = vpack.c.bf16 %v243_v37, %v242_v36  ;;  %s898_s6 = scalar_lea.vmem %s1147_s27, 128  ;;  %s978_s19 = smov [#allocation5]  }
  0x3f   : > { %865 = vset.pattern.permute.xlu0 %v974_v13  ;;  %867 = vset.pattern.permute.xlu1 %v975_v14  ;;  %p899_p6 = scmp.ne.s32.totalorder %s1147_s27, %s898_s6  ;;  %s902_s7 = sshll.u32 %s978_s19, 4  ;;  %s903_s7 = int_to_ptr.vmem [resolvable:$false] %s902_s7 }
  0x40   : > { %496 = vperm.xlu0 %865, %v485_v4   ;;  %518 = vperm.xlu1 %867, %v485_v4   ;;  %s904_s8 = scalar_lea.vmem %s903_s7, 256  ;;  %p905_p2 = scmp.lt.s32.totalorder %s1147_s27, %s903_s7 }
  0x41   : > { %787 = vmatpush1.bf16.msra.mxu1 %v786_v18  ;;  %772 = vmatmul.mubr.msk.f32.vlgmr.msra.gmra.mrb[2].mxu0 %vm254_vm2, %v252_v19  ;;  %p900_p10 = pnand %p899_p6, %p1202_p9  ;;  %p906_p3 = scmp.lt.s32.totalorder %s904_s8, %s898_s6 }
  0x42   : > { %788 = vmatprep.subr.bf16.mxu1 %v971_v2  ;;  %775 = vmatpush3.msk.msra.mxu0 %vm258_vm0, %v734_v24 }
  0x43   : > { %776 = vmatprep.mubr.msk.f32.mxu0 %vm973_vm1, %v972_v3  ;;  %p901_p12 = pneg %p900_p10  ;;  %p907_p4 = por %p906_p3, %p905_p2 }
  0x44   : > { %868 = vset.pattern.permute.xlu1 %v976_v22  ;;  %869 = vset.pattern.permute.xlu0 %v977_v23 }
  0x45   : > { %529 = vperm.xlu1 %868, %v485_v4   ;;  %540 = vperm.xlu0 %869, %v485_v4   ;;  %p908_p7 = pnand %p907_p4, %p901_p12 }
  0x46   : > { %790 = vmatpush1.bf16.msra.mxu1 %v789_v25  ;;  %777 = vmatmul.mubr.msk.f32.vlgmr.msra.gmra.mrb[4].mxu0 %vm254_vm2, %v253_v26 }
  0x47   : > { %791 = vmatprep.subr.bf16.mxu1 %v971_v2 }
  0x4a   : > { %793 = vmatpush1.bf16.msra.mxu1 %v792_v29 }
  0x4b   : > { %794 = vmatprep.subr.bf16.mxu1 %v971_v2 }
  0x4e   : > { %796 = vmatpush1.bf16.msra.mxu1 %v795_v32 }
  0x4f   : > { %797 = vmatprep.subr.bf16.mxu1 %v971_v2 }
  0x52   : > { %799 = vmatpush1.bf16.msra.mxu1 %v798_v35 }
  0x53   : > { %800 = vmatprep.subr.bf16.mxu1 %v971_v2 }
  0x56   : > { %802 = vmatpush1.bf16.msra.mxu1 %v801_v38 }
  0x57   : > { %586 = vmatprep.subr.mxu1 %v972_v3 }
  0x5a   : > { %587 = vmatpush1.msra.mxu1 %v244_v39 }
  0xba   : > { %v488_v43 = vpop.permute.xlu0 %487  ;;  %v508_v44 = vpop.permute.xlu1 %507 }
  0xbb   : > { %vm489_vm3 = vcmp.eq.s32.totalorder %v226_v41, %v488_v43  ;;  %vm490_vm4 = vcmp.eq.s32.totalorder %v227_v42, %v488_v43  ;;  %vm509_vm5 = vcmp.eq.s32.totalorder %v226_v41, %v508_v44  ;;  %vm510_vm6 = vcmp.eq.s32.totalorder %v227_v42, %v508_v44 }
  0xbc   : > { %v741_v47 = vsel %vm489_vm3, 1.0, %v972_v3  ;;  %v742_v48 = vsel %vm490_vm4, 1.0, %v972_v3  ;;  %v745_v53 = vsel %vm509_vm5, 1.0, %v972_v3  ;;  %v746_v54 = vsel %vm510_vm6, 1.0, %v972_v3 }
  0xbf   : > { %v497_v45 = vpop.permute.xlu0 %496  ;;  %v519_v46 = vpop.permute.xlu1 %518 }
  0xc0   : > { %vm498_vm7 = vcmp.eq.s32.totalorder %v226_v41, %v497_v45  ;;  %vm499_vm8 = vcmp.eq.s32.totalorder %v227_v42, %v497_v45  ;;  %vm520_vm9 = vcmp.eq.s32.totalorder %v226_v41, %v519_v46  ;;  %vm521_vm10 = vcmp.eq.s32.totalorder %v227_v42, %v519_v46 }
  0xc1   : > { %v743_v49 = vsel %vm498_vm7, 1.0, %v972_v3  ;;  %v744_v50 = vsel %vm499_vm8, 1.0, %v972_v3  ;;  %v747_v57 = vsel %vm520_vm9, 1.0, %v972_v3  ;;  %v748_v58 = vsel %vm521_vm10, 1.0, %v972_v3 }
  0xc2   : > { %v504_v51 = vadd.f32 %v743_v49, %v741_v47  ;;  %v505_v52 = vadd.f32 %v744_v50, %v742_v48 }
  0xc4   : > { %v515_v55 = vadd.f32 %v745_v53, %v504_v51  ;;  %v516_v56 = vadd.f32 %v746_v54, %v505_v52  ;;  %v530_v59 = vpop.permute.xlu1 %529  ;;  %v541_v60 = vpop.permute.xlu0 %540 }
  0xc5   : > { %vm531_vm11 = vcmp.eq.s32.totalorder %v226_v41, %v530_v59  ;;  %vm532_vm12 = vcmp.eq.s32.totalorder %v227_v42, %v530_v59  ;;  %vm542_vm13 = vcmp.eq.s32.totalorder %v226_v41, %v541_v60  ;;  %vm543_vm14 = vcmp.eq.s32.totalorder %v227_v42, %v541_v60 }
  0xc6   : > { %v526_v61 = vadd.f32 %v747_v57, %v515_v55  ;;  %v527_v62 = vadd.f32 %v748_v58, %v516_v56  ;;  %v749_v63 = vsel %vm531_vm11, 1.0, %v972_v3  ;;  %v750_v0 = vsel %vm532_vm12, 1.0, %v972_v3 }
  0xc7   : > { %v751_v1 = vsel %vm542_vm13, 1.0, %v972_v3  ;;  %v752_v2 = vsel %vm543_vm14, 1.0, %v972_v3  ;;  %v245_v3 = vld [vmem:[#allocation2 + $0x88] sm:$0xff] }
  0xc8   : > { %v537_v4 = vadd.f32 %v749_v63, %v526_v61  ;;  %v538_v5 = vadd.f32 %v750_v0, %v527_v62 }
  0xca   : > { %v548_v6 = vadd.f32 %v751_v1, %v537_v4  ;;  %v549_v7 = vadd.f32 %v752_v2, %v538_v5 }
  0xcc   : > { %753 = vmatprep.mubr.msk.f32.mxu1 %vm550_vm15, %v549_v7 }
  0xcd   : > { %619 = vmatmul.mubr.f32.vlgmr.msra.gmra.mrb[0].mxu1 %v548_v6 }
 0x10f   : > { %v328_v8 = vpop.f32.mrb[0].mxu0 }
 0x110   : > { %v768_v9 = vpop.f32.mrb[1].mxu0 }
 0x114   : > { %v404_v10 = vpop.f32.mrb[2].mxu0 }
 0x115   : > { %v405_v11 = vadd.f32 %v404_v10, %v328_v8  ;;  %v773_v12 = vpop.f32.mrb[3].mxu0 }
 0x119   : > { %v480_v13 = vpop.f32.mrb[4].mxu0 }
 0x11a   : > { %v484_v14 = vadd.f32 %v480_v13, %v405_v11  ;;  %v778_v15 = vpop.f32.mrb[5].mxu0 }
 0x1a0   : > { %v620_v16 = vpop.f32.mrb[0].mxu1 }
 0x1a1   : > { %v624_v17 = vadd.f32 %v620_v16, %v484_v14  ;;  %v622_v18 = vpop.f32.mrb[1].mxu1 }
 0x1a3   : > { %v625_v19 = vadd.f32 %v624_v17, %v245_v3 }
 0x1a5   : > { %626 = vst [vmem:[%s216_s23] sm:$0xff] %v625_v19 }
 0x1a6   : > { %911 = shalt.err (!%p908_p7)
}
 0x1a7   : > { %s912_s9 = scalar_lea.hbm %s1145_s30, 128  ;;  %s916_s12 = scalar_lea.hbm %s1191_s4, 256 }
 0x1a8   : > { %p913_p8 = scmp.ne.s32.totalorder %s1145_s30, %s912_s9  ;;  %p917_p1 = scmp.lt.u32.totalorder %s1145_s30, %s1191_s4 }
 0x1a9   : > { %p918_p0 = scmp.lt.u32.totalorder %s916_s12, %s912_s9  ;;  %p920_p6 = scmp.lt.u32.totalorder %s912_s9, %s1145_s30 }
 0x1aa   : > { %p914_p11 = pnand %p913_p8, %p1202_p9 }
 0x1ab   : > { %p919_p5 = por %p918_p0, %p917_p1 }
 0x1ac   : > { %p915_p13 = pneg %p914_p11 }
 0x1ad   : > { %p921_p10 = por %p920_p6, %p919_p5 }
 0x1af   : > { %p922_p12 = pnand %p921_p10, %p915_p13 }
 0x1b1   : > { %925 = shalt.err (!%p922_p12)
}
 0x1b2   : > { %807 = dma.vmem_to_hbm [thread:$0]  (%p1202_p9), %s1147_s27, 128, %s1145_s30, %s628_s5  }
 0x1b3 PF: > { %p819_p2 = scmp.ge.s32.totalorder %s964_s18, 2  ;;  %s653_s20 = sand.u32 1, %s952_s15  }
 0x1b4   : > { %p1203_p3 = scmp.ne.s32.totalorder %s1196_s26, 0  ;;  %s654_s22 = scalar_lea.sflag [#allocation4], %s653_s20 }
 0x1b6   : > { %p814_p4 = pnand %p819_p2, %p1203_p3 }
 0x1b8   : > { %947 = dma.done.wait (!%p814_p4), %s654_s22, 128  }
 0x1b9   : > { %949 = vsyncadd (!%p814_p4), %s654_s22, 4294967168  ;;  %p15_p7 = scmp.ge.s32.totalorder %s1029_s21, 4   ;;  %s1204_s15 = smov %s956_s16 }
 0x1ba   : > { %s1205_s16 = smov %s960_s17  ;;  %s1206_s17 = smov %s1040_s24 }
 0x1bb   : > { %s1207_s18 = smov %s1029_s21  ;;  %17 = sbr.rel (!%p15_p7) target bundleno = 4 (0x4), region = 81 }
 0x1c2   :  { %659 = vsyncpa [#allocation3], 1 }
 0x1c3   :  { %661 = vsyncpa [#allocation3 + $0x1], 1 }
 0x1c4   :  { %662 = vsyncpa [#allocation4], 1 }
 0x1c5   :  { %664 = vsyncpa [#allocation4 + $0x1], 1 }

</bundles_post_ra>
